<compile_context>
chip_gen: v5e
topology: v5e:2x2
jax: 0.10.0
libtpu: 0.0.40
codegen_flags: <defaults>
</compile_context>

<pallas_src>
import jax
import jax.numpy as jnp
from jax.experimental import pallas as pl
from jax.experimental.pallas import tpu as pltpu


def _mlp_kernel(x_ref,
                w1_ref, b1_ref,
                w2_ref, b2_ref,
                w3_ref, b3_ref,
                w4_ref, b4_ref,
                o_ref):
    """One batch tile. Activations carried as (features, TILE_B): batch on lanes.

    All four Linear layers run on the MXU (bf16 operands, f32 accumulation); the
    VPU only does bias-add + ReLU (+ single-pass bf16 downcast). The MXU has huge
    slack for this tiny network, so the K=3 / M=1 padded passes are free and the
    previous VPU broadcast-FMAs / XLU sublane reduce are eliminated.
    """
    x = x_ref[...].astype(jnp.bfloat16)                                   # (3, TB)

    # ---- Layer 1: Linear(3 -> 128) + ReLU.  (128,3)@(3,TB); Mosaic pads K=3.
    z1 = jnp.dot(w1_ref[...], x, preferred_element_type=jnp.float32)     # (128, TB) f32
    a1 = jnp.maximum(z1 + b1_ref[...], 0.0).astype(jnp.bfloat16)

    # ---- Layer 2: Linear(128 -> 256) + ReLU.
    z2 = jnp.dot(w2_ref[...], a1, preferred_element_type=jnp.float32)    # (256, TB) f32
    a2 = jnp.maximum(z2 + b2_ref[...], 0.0).astype(jnp.bfloat16)

    # ---- Layer 3: Linear(256 -> 128) + ReLU.
    z3 = jnp.dot(w3_ref[...], a2, preferred_element_type=jnp.float32)    # (128, TB) f32
    a3 = jnp.maximum(z3 + b3_ref[...], 0.0).astype(jnp.bfloat16)

    # ---- Layer 4: Linear(128 -> 1).  (1,128)@(128,TB) -> lane-dense (1, TB) store.
    o_ref[...] = (jnp.dot(w4_ref[...], a3, preferred_element_type=jnp.float32)
                  + b4_ref[...])


def net_forward(x, params, *, tile_b=2048):
    """x: (B, 3) float32. params in PyTorch nn.Linear layout (w: (out, in), b: (out,)).
    Returns (B, 1) float32."""
    B = x.shape[0]
    # Large tiles amortize per-grid-step overhead; clamp for small batches and cap
    # at 4096 columns (~14 MiB of live intermediates). Must be a 128-lane multiple.
    tile_b = max(128, min(tile_b, pl.next_power_of_2(B), 4096))
    assert tile_b % 128 == 0
    n_tiles = pl.cdiv(B, tile_b)
    b_pad = n_tiles * tile_b

    # Transposed layout: batch on the lane axis; pad batch to a tile multiple.
    # (Padded tail columns compute garbage and are sliced off below.)
    xt = jnp.pad(x.T.astype(jnp.float32), ((0, 0), (0, b_pad - B)))       # (3, Bp)

    # Kernel-layout params: PyTorch (out, in) weights used directly, pre-cast to
    # bf16 (native MXU dtype, halves their DMA); biases as f32 (out, 1) columns.
    w1 = params["w1"].astype(jnp.bfloat16)                 # (128, 3)
    b1 = params["b1"].reshape(-1, 1).astype(jnp.float32)   # (128, 1)
    w2 = params["w2"].astype(jnp.bfloat16)                 # (256, 128)
    b2 = params["b2"].reshape(-1, 1).astype(jnp.float32)   # (256, 1)
    w3 = params["w3"].astype(jnp.bfloat16)                 # (128, 256)
    b3 = params["b3"].reshape(-1, 1).astype(jnp.float32)   # (128, 1)
    w4 = params["w4"].astype(jnp.bfloat16)                 # (1, 128)  (out,in) as-is
    b4 = params["b4"].reshape(1, 1).astype(jnp.float32)    # (1, 1)

    # Weights/biases: constant block index => fetched once, resident across tiles.
    resident = lambda a: pl.BlockSpec(a.shape, lambda i: (0, 0))

    out = pl.pallas_call(
        _mlp_kernel,
        out_shape=jax.ShapeDtypeStruct((1, b_pad), jnp.float32),
        grid_spec=pltpu.PrefetchScalarGridSpec(
            num_scalar_prefetch=0,
            grid=(n_tiles,),
            in_specs=[
                pl.BlockSpec((3, tile_b), lambda i: (0, i)),   # x tile (pipelined)
                resident(w1), resident(b1),
                resident(w2), resident(b2),
                resident(w3), resident(b3),
                resident(w4), resident(b4),
            ],
            out_specs=pl.BlockSpec((1, tile_b), lambda i: (0, i)),
        ),
        compiler_params=pltpu.CompilerParams(
            # Pipeline tiles + shard across TCs on v7x; CORE_PARALLEL if dump
            # shows single-core execution.
            dimension_semantics=("parallel",),
            # Explicit scoped-VMEM limit so TILE_B up to 4096 compiles on v5e
            # (16 MiB default) while staying under v7x's 64 MiB physical VMEM.
            vmem_limit_bytes=48 * 1024 * 1024,
        ),
    )(xt, w1, b1, w2, b2, w3, b3, w4, b4)

    return out[0, :B].reshape(B, 1)


def init_params(key):
    """PyTorch nn.Linear default init: U[-1/sqrt(fan_in), 1/sqrt(fan_in)].
    Weights stored PyTorch-style as (out_features, in_features); biases (out_features,)."""
    dims = [(3, 128), (128, 256), (256, 128), (128, 1)]
    params = {}
    keys = jax.random.split(key, 2 * len(dims))
    for i, (fan_in, fan_out) in enumerate(dims):
        bound = fan_in ** -0.5
        params[f"w{i + 1}"] = jax.random.uniform(
            keys[2 * i], (fan_out, fan_in), minval=-bound, maxval=bound, dtype=jnp.float32)
        params[f"b{i + 1}"] = jax.random.uniform(
            keys[2 * i + 1], (fan_out,), minval=-bound, maxval=bound, dtype=jnp.float32)
    return params


def _reference(x, params):
    ref = x
    for i in range(1, 5):
        ref = ref @ params[f"w{i}"].T + params[f"b{i}"]
        if i < 4:
            ref = jnp.maximum(ref, 0.0)
    return ref


if __name__ == "__main__":
    key = jax.random.PRNGKey(0)
    pkey, xkey1, xkey2 = jax.random.split(key, 3)
    params = init_params(pkey)

    # Small-batch case (single 128-lane tile, grid=(1,)), default tile_b path.
    B = 8
    x = jax.random.normal(xkey1, (B, 3), dtype=jnp.float32)
    out = jax.block_until_ready(net_forward(x, params))
    ref = _reference(x, params)
    assert out.shape == (B, 1)
    assert jnp.allclose(out, ref, atol=5e-2, rtol=5e-2), float(jnp.max(jnp.abs(out - ref)))

    # Non-multiple batch with an explicit small tile: exercises the multi-tile
    # batch grid (3 steps) and tail padding.
    B2 = 300
    x2 = jax.random.normal(xkey2, (B2, 3), dtype=jnp.float32)
    out2 = jax.block_until_ready(net_forward(x2, params, tile_b=128))
    ref2 = _reference(x2, params)
    assert out2.shape == (B2, 1)
    assert jnp.allclose(out2, ref2, atol=5e-2, rtol=5e-2), float(jnp.max(jnp.abs(out2 - ref2)))

    print("KERNEL_OK")
</pallas_src>

<mosaic_0001>
module attributes {stable_mosaic.version = 11 : i64} {
  func.func @_mlp_kernel(%arg0: i32, %arg1: memref<3x128xf32, #tpu.memory_space<vmem>>, %arg2: memref<128x3xbf16, #tpu.memory_space<vmem>>, %arg3: memref<128x1xf32, #tpu.memory_space<vmem>>, %arg4: memref<256x128xbf16, #tpu.memory_space<vmem>>, %arg5: memref<256x1xf32, #tpu.memory_space<vmem>>, %arg6: memref<128x256xbf16, #tpu.memory_space<vmem>>, %arg7: memref<128x1xf32, #tpu.memory_space<vmem>>, %arg8: memref<1x128xbf16, #tpu.memory_space<vmem>>, %arg9: memref<1x1xf32, #tpu.memory_space<vmem>>, %arg10: memref<1x128xf32, #tpu.memory_space<vmem>>) attributes {dimension_semantics = [#tpu.dimension_semantics<parallel>], iteration_bounds = array<i64: 1>, scalar_prefetch = 0 : i64, scratch_operands = 0 : i64, tpu.core_type = #tpu.core_type<tc>, window_params = [{transform_indices = @transform_0, window_bounds = array<i64: 3, 128>}, {pipeline_mode = #tpu.pipeline_mode<synchronous>, transform_indices = @transform_1, window_bounds = array<i64: 128, 3>}, {pipeline_mode = #tpu.pipeline_mode<synchronous>, transform_indices = @transform_2, window_bounds = array<i64: 128, 1>}, {pipeline_mode = #tpu.pipeline_mode<synchronous>, transform_indices = @transform_3, window_bounds = array<i64: 256, 128>}, {pipeline_mode = #tpu.pipeline_mode<synchronous>, transform_indices = @transform_4, window_bounds = array<i64: 256, 1>}, {pipeline_mode = #tpu.pipeline_mode<synchronous>, transform_indices = @transform_5, window_bounds = array<i64: 128, 256>}, {pipeline_mode = #tpu.pipeline_mode<synchronous>, transform_indices = @transform_6, window_bounds = array<i64: 128, 1>}, {pipeline_mode = #tpu.pipeline_mode<synchronous>, transform_indices = @transform_7, window_bounds = array<i64: 1, 128>}, {pipeline_mode = #tpu.pipeline_mode<synchronous>, transform_indices = @transform_8, window_bounds = array<i64: 1, 1>}, {transform_indices = @transform_9, window_bounds = array<i64: 1, 128>}]} {
    %c0 = arith.constant 0 : index
    %c0_0 = arith.constant 0 : index
    %0 = vector.load %arg1[%c0, %c0_0] : memref<3x128xf32, #tpu.memory_space<vmem>>, vector<3x128xf32>
    %1 = arith.truncf %0 : vector<3x128xf32> to vector<3x128xbf16>
    %c0_1 = arith.constant 0 : index
    %c0_2 = arith.constant 0 : index
    %2 = vector.load %arg2[%c0_1, %c0_2] : memref<128x3xbf16, #tpu.memory_space<vmem>>, vector<128x3xbf16>
    %cst = arith.constant dense<0.000000e+00> : vector<128x128xf32>
    %3 = tpu.matmul %2, %1, %cst {dimension_numbers = #tpu.dot_dimension_numbers<[1], [0], [0], [1], [0, 0, 1, 1], [], []>} : vector<128x3xbf16>, vector<3x128xbf16>, vector<128x128xf32> -> vector<128x128xf32>
    %c0_3 = arith.constant 0 : index
    %c0_4 = arith.constant 0 : index
    %4 = vector.load %arg3[%c0_3, %c0_4] : memref<128x1xf32, #tpu.memory_space<vmem>>, vector<128x1xf32>
    %5 = vector.broadcast %4 : vector<128x1xf32> to vector<128x128xf32>
    %6 = arith.addf %3, %5 : vector<128x128xf32>
    %cst_5 = arith.constant 0.000000e+00 : f32
    %7 = vector.broadcast %cst_5 : f32 to vector<128x128xf32>
    %8 = arith.maximumf %6, %7 : vector<128x128xf32>
    %9 = arith.truncf %8 : vector<128x128xf32> to vector<128x128xbf16>
    %c0_6 = arith.constant 0 : index
    %c0_7 = arith.constant 0 : index
    %10 = vector.load %arg4[%c0_6, %c0_7] : memref<256x128xbf16, #tpu.memory_space<vmem>>, vector<256x128xbf16>
    %cst_8 = arith.constant dense<0.000000e+00> : vector<256x128xf32>
    %11 = tpu.matmul %10, %9, %cst_8 {dimension_numbers = #tpu.dot_dimension_numbers<[1], [0], [0], [1], [0, 0, 1, 1], [], []>} : vector<256x128xbf16>, vector<128x128xbf16>, vector<256x128xf32> -> vector<256x128xf32>
    %c0_9 = arith.constant 0 : index
    %c0_10 = arith.constant 0 : index
    %12 = vector.load %arg5[%c0_9, %c0_10] : memref<256x1xf32, #tpu.memory_space<vmem>>, vector<256x1xf32>
    %13 = vector.broadcast %12 : vector<256x1xf32> to vector<256x128xf32>
    %14 = arith.addf %11, %13 : vector<256x128xf32>
    %cst_11 = arith.constant 0.000000e+00 : f32
    %15 = vector.broadcast %cst_11 : f32 to vector<256x128xf32>
    %16 = arith.maximumf %14, %15 : vector<256x128xf32>
    %17 = arith.truncf %16 : vector<256x128xf32> to vector<256x128xbf16>
    %c0_12 = arith.constant 0 : index
    %c0_13 = arith.constant 0 : index
    %18 = vector.load %arg6[%c0_12, %c0_13] : memref<128x256xbf16, #tpu.memory_space<vmem>>, vector<128x256xbf16>
    %cst_14 = arith.constant dense<0.000000e+00> : vector<128x128xf32>
    %19 = tpu.matmul %18, %17, %cst_14 {dimension_numbers = #tpu.dot_dimension_numbers<[1], [0], [0], [1], [0, 0, 1, 1], [], []>} : vector<128x256xbf16>, vector<256x128xbf16>, vector<128x128xf32> -> vector<128x128xf32>
    %c0_15 = arith.constant 0 : index
    %c0_16 = arith.constant 0 : index
    %20 = vector.load %arg7[%c0_15, %c0_16] : memref<128x1xf32, #tpu.memory_space<vmem>>, vector<128x1xf32>
    %21 = vector.broadcast %20 : vector<128x1xf32> to vector<128x128xf32>
    %22 = arith.addf %19, %21 : vector<128x128xf32>
    %cst_17 = arith.constant 0.000000e+00 : f32
    %23 = vector.broadcast %cst_17 : f32 to vector<128x128xf32>
    %24 = arith.maximumf %22, %23 : vector<128x128xf32>
    %25 = arith.truncf %24 : vector<128x128xf32> to vector<128x128xbf16>
    %c0_18 = arith.constant 0 : index
    %c0_19 = arith.constant 0 : index
    %26 = vector.load %arg8[%c0_18, %c0_19] : memref<1x128xbf16, #tpu.memory_space<vmem>>, vector<1x128xbf16>
    %cst_20 = arith.constant dense<0.000000e+00> : vector<1x128xf32>
    %27 = tpu.matmul %26, %25, %cst_20 {dimension_numbers = #tpu.dot_dimension_numbers<[1], [0], [0], [1], [0, 0, 1, 1], [], []>} : vector<1x128xbf16>, vector<128x128xbf16>, vector<1x128xf32> -> vector<1x128xf32>
    %c0_21 = arith.constant 0 : index
    %c0_22 = arith.constant 0 : index
    %28 = vector.load %arg9[%c0_21, %c0_22] : memref<1x1xf32, #tpu.memory_space<vmem>>, vector<1x1xf32>
    %29 = vector.broadcast %28 : vector<1x1xf32> to vector<1x128xf32>
    %30 = arith.addf %27, %29 : vector<1x128xf32>
    %c0_23 = arith.constant 0 : index
    %c0_24 = arith.constant 0 : index
    %31 = vector.load %arg10[%c0_23, %c0_24] : memref<1x128xf32, #tpu.memory_space<vmem>>, vector<1x128xf32>
    tpu.vector_store %arg10[%c0_23, %c0_24], %30 {strides = array<i32>} : memref<1x128xf32, #tpu.memory_space<vmem>>, vector<1x128xf32>,
    return
  }
  func.func @transform_0(%arg0: i32) -> (i32, i32) {
    %c0_i32 = arith.constant 0 : i32
    %c0_i32_0 = arith.constant 0 : i32
    return %c0_i32, %arg0 : i32, i32
  }
  func.func @transform_1(%arg0: i32) -> (i32, i32) {
    %c0_i32 = arith.constant 0 : i32
    %c0_i32_0 = arith.constant 0 : i32
    %c0_i32_1 = arith.constant 0 : i32
    return %c0_i32, %c0_i32_0 : i32, i32
  }
  func.func @transform_2(%arg0: i32) -> (i32, i32) {
    %c0_i32 = arith.constant 0 : i32
    %c0_i32_0 = arith.constant 0 : i32
    %c0_i32_1 = arith.constant 0 : i32
    return %c0_i32, %c0_i32_0 : i32, i32
  }
  func.func @transform_3(%arg0: i32) -> (i32, i32) {
    %c0_i32 = arith.constant 0 : i32
    %c0_i32_0 = arith.constant 0 : i32
    %c0_i32_1 = arith.constant 0 : i32
    return %c0_i32, %c0_i32_0 : i32, i32
  }
  func.func @transform_4(%arg0: i32) -> (i32, i32) {
    %c0_i32 = arith.constant 0 : i32
    %c0_i32_0 = arith.constant 0 : i32
    %c0_i32_1 = arith.constant 0 : i32
    return %c0_i32, %c0_i32_0 : i32, i32
  }
  func.func @transform_5(%arg0: i32) -> (i32, i32) {
    %c0_i32 = arith.constant 0 : i32
    %c0_i32_0 = arith.constant 0 : i32
    %c0_i32_1 = arith.constant 0 : i32
    return %c0_i32, %c0_i32_0 : i32, i32
  }
  func.func @transform_6(%arg0: i32) -> (i32, i32) {
    %c0_i32 = arith.constant 0 : i32
    %c0_i32_0 = arith.constant 0 : i32
    %c0_i32_1 = arith.constant 0 : i32
    return %c0_i32, %c0_i32_0 : i32, i32
  }
  func.func @transform_7(%arg0: i32) -> (i32, i32) {
    %c0_i32 = arith.constant 0 : i32
    %c0_i32_0 = arith.constant 0 : i32
    %c0_i32_1 = arith.constant 0 : i32
    return %c0_i32, %c0_i32_0 : i32, i32
  }
  func.func @transform_8(%arg0: i32) -> (i32, i32) {
    %c0_i32 = arith.constant 0 : i32
    %c0_i32_0 = arith.constant 0 : i32
    %c0_i32_1 = arith.constant 0 : i32
    return %c0_i32, %c0_i32_0 : i32, i32
  }
  func.func @transform_9(%arg0: i32) -> (i32, i32) {
    %c0_i32 = arith.constant 0 : i32
    %c0_i32_0 = arith.constant 0 : i32
    return %c0_i32, %arg0 : i32, i32
  }
}

</mosaic_0001>

<bundles_post_ra>
// kernel: tpu_custom_call.1
= control target key start
LH: loop header
LB: loop body
LE: loop exit
PB: predicated region body
PF: predicated region fallthrough
CT: control target
= control target key end

     0   :  { %s1904_s0 = inlined_call_operand.vmem [shape: f32[3,128], index: 0, kind: input, shape index: {}]   ;;  %s1905_s1 = inlined_call_operand.vmem [shape: bf16[128,3], index: 1, kind: input, shape index: {}]   ;;  %s1906_s2 = inlined_call_operand.vmem [shape: f32[128,1], index: 2, kind: input, shape index: {}]   ;;  %s1907_s3 = inlined_call_operand.vmem [shape: bf16[256,128], index: 3, kind: input, shape index: {}]   ;;  %s1908_s4 = inlined_call_operand.vmem [shape: f32[256,1], index: 4, kind: input, shape index: {}]   ;;  %s1909_s5 = inlined_call_operand.vmem [shape: bf16[128,256], index: 5, kind: input, shape index: {}]   ;;  %s1910_s6 = inlined_call_operand.vmem [shape: f32[128,1], index: 6, kind: input, shape index: {}]   ;;  %s1911_s7 = inlined_call_operand.vmem [shape: bf16[1,128], index: 7, kind: input, shape index: {}]   ;;  %s1912_s8 = inlined_call_operand.<no memory space> [shape: f32[1,1], index: 8, kind: input, shape index: {}]   ;;  %s1913_s9 = inlined_call_operand.hbm [shape: f32[1,128], index: 9, kind: output, shape index: {}]  }
   0x1   :  { %v14_v0 = vstv %s1912_s8 }
   0x2   :  { %15 = vst [vmem:[#allocation2] sm:$0x1] %v14_v0 }
   0x3   :  { %v68_v1 = vld [vmem:[%s1906_s2 + $0x70] sm:$0xff]  ;;  %v66_v2 = vld [vmem:[%s1906_s2 + $0x60] sm:$0xff]  ;;  %vm215_vm0 = vcmask 1040384   ;;  %vm216_vm1 = vcmask 1041408   ;;  %v1354_v4 = vmov 0   ;;  %v1355_v7 = vmov 65535  }
   0x4   :  { %v64_v3 = vld [vmem:[%s1906_s2 + $0x50] sm:$0xff]  ;;  %1327 = vset.pattern.permute.xlu2 %v1354_v4  ;;  %1326 = vset.pattern.permute.xlu1 %v1354_v4  ;;  %v36_v5 = vld [vmem:[%s1904_s0] sm:$0x7]  ;;  %v217_v8 = vsel %vm215_vm0, 4294967295, %v1355_v7  ;;  %v1277_v12 = vld [vmem:[%s1905_s1 + $0x28] sm:$0xff]  ;;  %vm190_vm2 = vcmask 23552  }
   0x5   :  { %1325 = vset.pattern.permute.xlu0 %v1354_v4  ;;  %132 = vperm.xlu1 %1326, %v66_v2   ;;  %v37_v6 = vpack.c.bf16 %v36_v5, %v36_v5  ;;  %v218_v9 = vsel %vm216_vm1, %v217_v8, 0  ;;  %v1274_v11 = vld [vmem:[%s1905_s1 + $0x10] sm:$0xff]  ;;  %v1272_v13 = vld [vmem:[%s1905_s1] sm:$0xff]  ;;  %v67_v14 = vld [vmem:[%s1906_s2 + $0x68] sm:$0xff] }
   0x6   :  { %142 = vperm.xlu0 %1325, %v68_v1   ;;  %122 = vperm.xlu2 %1327, %v64_v3   ;;  %v69_v15 = vld [vmem:[%s1906_s2 + $0x78] sm:$0xff] }
   0x7   :  { %v220_v10 = vand.u32 %v218_v9, %v37_v6  ;;  %v65_v16 = vld [vmem:[%s1906_s2 + $0x58] sm:$0xff] }
   0x9   :  { %1312 = vmatpush.bf16.msra.mxu2 %v220_v10  ;;  %1313 = vmatpush.bf16.msra.mxu3 %v220_v10 }
   0xa   :  { %229 = vmatpush.bf16.msra.mxu0 %v220_v10 }
   0xb   :  { %16 = vsyncpa [#allocation4], 0  ;;  %v63_v17 = vld [vmem:[%s1906_s2 + $0x48] sm:$0xff]  ;;  %v62_v18 = vld [vmem:[%s1906_s2 + $0x40] sm:$0xff]  ;;  %s1356_s19 = smov [#allocation3]   ;;  %s1095_s0 = sshll.u32 %s1913_s9, 4  ;;  %s1096_s0 = int_to_ptr.hbm [resolvable:$true] %s1095_s0 }
   0xc   :  { %1138 = vmatmul.msk.bf16.vlgmr.msra.gmra.mxu2 %vm190_vm2, %v1274_v11  ;;  %1141 = vmatmul.msk.bf16.vlgmr.msra.gmra.mxu3 %vm190_vm2, %v1277_v12  ;;  %v60_v19 = vld [vmem:[%s1906_s2 + $0x30] sm:$0xff]  ;;  %v1275_v20 = vld [vmem:[%s1905_s1 + $0x18] sm:$0xff]  ;;  %v1273_v22 = vld [vmem:[%s1905_s1 + $0x8] sm:$0xff]  ;;  %s1093_s20 = sshll.u32 %s1356_s19, 4  ;;  %s1094_s20 = int_to_ptr.vmem [resolvable:$true] %s1093_s20 }
   0xd   :  { %137 = vperm.xlu1 %1326, %v67_v14   ;;  %1136 = vmatmul.msk.bf16.vlgmr.msra.gmra.mxu0 %vm190_vm2, %v1272_v13  ;;  %v1278_v21 = vld [vmem:[%s1905_s1 + $0x30] sm:$0xff]  ;;  %v58_v23 = vld [vmem:[%s1906_s2 + $0x20] sm:$0xff]  ;;  %v61_v24 = vld [vmem:[%s1906_s2 + $0x38] sm:$0xff] }
   0xe   :  { %147 = vperm.xlu0 %1325, %v69_v15   ;;  %127 = vperm.xlu2 %1327, %v65_v16   ;;  %v59_v25 = vld [vmem:[%s1906_s2 + $0x28] sm:$0xff]  ;;  %v57_v26 = vld [vmem:[%s1906_s2 + $0x18] sm:$0xff]  ;;  %v56_v27 = vld [vmem:[%s1906_s2 + $0x10] sm:$0xff] }
   0xf   :  { %v54_v28 = vld [vmem:[%s1906_s2] sm:$0xff]  ;;  %v1279_v30 = vld [vmem:[%s1905_s1 + $0x38] sm:$0xff]  ;;  %v341_v31 = vld [vmem:[%s1908_s4 + $0x70] sm:$0xff] }
  0x10   :  { %v1276_v29 = vld [vmem:[%s1905_s1 + $0x20] sm:$0xff]  ;;  %v55_v32 = vld [vmem:[%s1906_s2 + $0x8] sm:$0xff]  ;;  %v342_v33 = vld [vmem:[%s1908_s4 + $0x78] sm:$0xff] }
  0x11   :  { %v358_v34 = vld [vmem:[%s1908_s4 + $0xf8] sm:$0xff]  ;;  %v357_v35 = vld [vmem:[%s1908_s4 + $0xf0] sm:$0xff]  ;;  %v339_v36 = vld [vmem:[%s1908_s4 + $0x60] sm:$0xff] }
  0x12   :  { %v355_v37 = vld [vmem:[%s1908_s4 + $0xe0] sm:$0xff]  ;;  %v340_v38 = vld [vmem:[%s1908_s4 + $0x68] sm:$0xff]  ;;  %v338_v40 = vld [vmem:[%s1908_s4 + $0x58] sm:$0xff] }
  0x13   :  { %v356_v39 = vld [vmem:[%s1908_s4 + $0xe8] sm:$0xff]  ;;  %v337_v41 = vld [vmem:[%s1908_s4 + $0x50] sm:$0xff]  ;;  %v335_v43 = vld [vmem:[%s1908_s4 + $0x40] sm:$0xff] }
  0x14   :  { %v353_v42 = vld [vmem:[%s1908_s4 + $0xd0] sm:$0xff]  ;;  %v354_v44 = vld [vmem:[%s1908_s4 + $0xd8] sm:$0xff]  ;;  %v336_v45 = vld [vmem:[%s1908_s4 + $0x48] sm:$0xff] }
  0x15   :  { %117 = vperm.xlu1 %1326, %v63_v17   ;;  %v352_v46 = vld [vmem:[%s1908_s4 + $0xc8] sm:$0xff]  ;;  %v351_v47 = vld [vmem:[%s1908_s4 + $0xc0] sm:$0xff]  ;;  %v333_v48 = vld [vmem:[%s1908_s4 + $0x30] sm:$0xff] }
  0x16   :  { %112 = vperm.xlu0 %1325, %v62_v18   ;;  %102 = vperm.xlu2 %1327, %v60_v19   ;;  %v349_v49 = vld [vmem:[%s1908_s4 + $0xb0] sm:$0xff]  ;;  %v334_v50 = vld [vmem:[%s1908_s4 + $0x38] sm:$0xff]  ;;  %v332_v52 = vld [vmem:[%s1908_s4 + $0x28] sm:$0xff] }
  0x17   :  { %v350_v51 = vld [vmem:[%s1908_s4 + $0xb8] sm:$0xff]  ;;  %v331_v53 = vld [vmem:[%s1908_s4 + $0x20] sm:$0xff]  ;;  %v329_v55 = vld [vmem:[%s1908_s4 + $0x10] sm:$0xff] }
  0x18   :  { %v347_v54 = vld [vmem:[%s1908_s4 + $0xa0] sm:$0xff]  ;;  %v348_v56 = vld [vmem:[%s1908_s4 + $0xa8] sm:$0xff]  ;;  %v330_v57 = vld [vmem:[%s1908_s4 + $0x18] sm:$0xff] }
  0x19   :  { %v346_v58 = vld [vmem:[%s1908_s4 + $0x98] sm:$0xff]  ;;  %v345_v59 = vld [vmem:[%s1908_s4 + $0x90] sm:$0xff]  ;;  %v327_v60 = vld [vmem:[%s1908_s4] sm:$0xff] }
  0x1a   :  { %v343_v61 = vld [vmem:[%s1908_s4 + $0x80] sm:$0xff]  ;;  %v328_v62 = vld [vmem:[%s1908_s4 + $0x8] sm:$0xff]  ;;  %v783_v0 = vld [vmem:[%s1910_s6 + $0x78] sm:$0xff] }
  0x1b   :  { %v344_v63 = vld [vmem:[%s1908_s4 + $0x88] sm:$0xff]  ;;  %v782_v1 = vld [vmem:[%s1910_s6 + $0x70] sm:$0xff]  ;;  %v780_v2 = vld [vmem:[%s1910_s6 + $0x60] sm:$0xff] }
  0x1c   :  { %1139 = vmatmul.msk.bf16.gmra.mxu2 %vm190_vm2, %v1275_v20  ;;  %1142 = vmatmul.msk.bf16.gmra.mxu3 %vm190_vm2, %v1278_v21  ;;  %v778_v3 = vld [vmem:[%s1910_s6 + $0x50] sm:$0xff]  ;;  %v781_v4 = vld [vmem:[%s1910_s6 + $0x68] sm:$0xff]  ;;  %v779_v5 = vld [vmem:[%s1910_s6 + $0x58] sm:$0xff] }
  0x1d   :  { %92 = vperm.xlu1 %1326, %v58_v23   ;;  %1137 = vmatmul.msk.bf16.gmra.mxu0 %vm190_vm2, %v1273_v22  ;;  %v777_v8 = vld [vmem:[%s1910_s6 + $0x48] sm:$0xff]  ;;  %v776_v9 = vld [vmem:[%s1910_s6 + $0x40] sm:$0xff]  ;;  %v774_v10 = vld [vmem:[%s1910_s6 + $0x30] sm:$0xff] }
  0x1e   :  { %107 = vperm.xlu0 %1325, %v61_v24   ;;  %97 = vperm.xlu2 %1327, %v59_v25   ;;  %v772_v13 = vld [vmem:[%s1910_s6 + $0x20] sm:$0xff]  ;;  %v775_v14 = vld [vmem:[%s1910_s6 + $0x38] sm:$0xff]  ;;  %v773_v15 = vld [vmem:[%s1910_s6 + $0x28] sm:$0xff] }
  0x1f   :  { %v771_v19 = vld [vmem:[%s1910_s6 + $0x18] sm:$0xff]  ;;  %v770_v21 = vld [vmem:[%s1910_s6 + $0x10] sm:$0xff]  ;;  %v768_v22 = vld [vmem:[%s1910_s6] sm:$0xff] }
  0x25   :  { %87 = vperm.xlu1 %1326, %v57_v26  }
  0x26   :  { %82 = vperm.xlu0 %1325, %v56_v27   ;;  %72 = vperm.xlu2 %1327, %v54_v28   ;;  %v1067_v27 = vld [vmem:[#allocation2] sm:$0x1] }
  0x2c   :  { %1140 = vmatmul.msk.bf16.gmra.mxu2 %vm190_vm2, %v1276_v29  ;;  %1143 = vmatmul.msk.bf16.gmra.mxu3 %vm190_vm2, %v1279_v30  ;;  %v769_v29 = vld [vmem:[%s1910_s6 + $0x8] sm:$0xff] }
  0x2d   :  { %431 = vperm.xlu1 %1326, %v341_v31  }
  0x2e   :  { %77 = vperm.xlu0 %1325, %v55_v32   ;;  %436 = vperm.xlu2 %1327, %v342_v33  }
  0x35   :  { %516 = vperm.xlu1 %1326, %v358_v34  }
  0x36   :  { %511 = vperm.xlu0 %1325, %v357_v35   ;;  %421 = vperm.xlu2 %1327, %v339_v36  }
  0x3d   :  { %501 = vperm.xlu1 %1326, %v355_v37  }
  0x3e   :  { %426 = vperm.xlu0 %1325, %v340_v38   ;;  %506 = vperm.xlu2 %1327, %v356_v39  }
  0x45   :  { %416 = vperm.xlu1 %1326, %v338_v40  }
  0x46   :  { %411 = vperm.xlu0 %1325, %v337_v41   ;;  %491 = vperm.xlu2 %1327, %v353_v42  }
  0x4d   :  { %401 = vperm.xlu1 %1326, %v335_v43  }
  0x4e   :  { %496 = vperm.xlu0 %1325, %v354_v44   ;;  %406 = vperm.xlu2 %1327, %v336_v45  }
  0x55   :  { %486 = vperm.xlu1 %1326, %v352_v46  }
  0x56   :  { %481 = vperm.xlu0 %1325, %v351_v47   ;;  %391 = vperm.xlu2 %1327, %v333_v48  }
  0x5d   :  { %471 = vperm.xlu1 %1326, %v349_v49  }
  0x5e   :  { %396 = vperm.xlu0 %1325, %v334_v50   ;;  %476 = vperm.xlu2 %1327, %v350_v51  }
  0x60   :  { %v123_v23 = vpop.permute.xlu2 %122 }
  0x65   :  { %386 = vperm.xlu1 %1326, %v332_v52  }
  0x66   :  { %381 = vperm.xlu0 %1325, %v331_v53   ;;  %461 = vperm.xlu2 %1327, %v347_v54  }
  0x68   :  { %v128_v32 = vpop.permute.xlu2 %127 }
  0x6d   :  { %371 = vperm.xlu1 %1326, %v329_v55  }
  0x6e   :  { %466 = vperm.xlu0 %1325, %v348_v56   ;;  %376 = vperm.xlu2 %1327, %v330_v57  }
  0x70   :  { %v103_v41 = vpop.permute.xlu2 %102 }
  0x75   :  { %456 = vperm.xlu1 %1326, %v346_v58  }
  0x76   :  { %451 = vperm.xlu0 %1325, %v345_v59   ;;  %361 = vperm.xlu2 %1327, %v327_v60  }
  0x77   :  { %v133_v20 = vpop.permute.xlu1 %132 }
  0x78   :  { %v143_v16 = vpop.permute.xlu0 %142  ;;  %v98_v59 = vpop.permute.xlu2 %97 }
  0x7d   :  { %441 = vperm.xlu1 %1326, %v343_v61  }
  0x7e   :  { %366 = vperm.xlu0 %1325, %v328_v62   ;;  %446 = vperm.xlu2 %1327, %v344_v63  }
  0x7f   :  { %v138_v30 = vpop.permute.xlu1 %137 }
  0x80   :  { %v148_v24 = vpop.permute.xlu0 %147 }
  0x85   :  { %861 = vperm.xlu1 %1326, %v783_v0  }
  0x86   :  { %856 = vperm.xlu0 %1325, %v782_v1   ;;  %846 = vperm.xlu2 %1327, %v780_v2  }
  0x87   :  { %v118_v37 = vpop.permute.xlu1 %117 }
  0x88   :  { %v113_v33 = vpop.permute.xlu0 %112 }
  0x8a   :  { %v1638_v28 = vpop.f32.mrf.mxu0 }
  0x8d   :  { %836 = vperm.xlu1 %1326, %v778_v3  }
  0x8e   :  { %851 = vperm.xlu0 %1325, %v781_v4   ;;  %841 = vperm.xlu2 %1327, %v779_v5  }
  0x8f   :  { %v1607_v6 = vpop.f32.mrf.mxu2  ;;  %v256_v7 = vpop.f32.mrf.mxu3 }
  0x90   :  { %v108_v45 = vpop.permute.xlu0 %107  ;;  %v257_v50 = vadd.f32 %v256_v7, %v123_v23  ;;  %v93_v56 = vpop.permute.xlu1 %92 }
  0x91   :  { %v242_v2 = vadd.f32 %v1607_v6, %v93_v56 }
  0x92   :  { %v233_v35 = vpop.f32.mrf.mxu0  ;;  %v281_v57 = vmax.f32 %v257_v50, 0.0 }
  0x95   :  { %831 = vperm.xlu1 %1326, %v777_v8  }
  0x96   :  { %826 = vperm.xlu0 %1325, %v776_v9   ;;  %816 = vperm.xlu2 %1327, %v774_v10   ;;  %v275_v9 = vmax.f32 %v242_v2, 0.0 }
  0x97   :  { %v1618_v11 = vpop.f32.mrf.mxu2  ;;  %v258_v12 = vpop.f32.mrf.mxu3 }
  0x98   :  { %v259_v46 = vadd.f32 %v258_v12, %v128_v32  ;;  %v83_v0 = vpop.permute.xlu0 %82  ;;  %v244_v3 = vadd.f32 %v1618_v11, %v98_v59  ;;  %v88_v10 = vpop.permute.xlu1 %87 }
  0x9a   :  { %v236_v52 = vpop.f32.mrf.mxu0  ;;  %v282_v53 = vmax.f32 %v259_v46, 0.0  ;;  %v276_v12 = vmax.f32 %v244_v3, 0.0  ;;  %v1291_v46 = vld [vmem:[%s1907_s3 + $0x58] sm:$0xff] }
  0x9c   :  { %v292_v63 = vpack.c.bf16 %v282_v53, %v281_v57  ;;  %v1292_v53 = vld [vmem:[%s1907_s3 + $0x60] sm:$0xff]  ;;  %v1293_v57 = vld [vmem:[%s1907_s3 + $0x68] sm:$0xff] }
  0x9d   :  { %806 = vperm.xlu1 %1326, %v772_v13   ;;  %v237_v13 = vadd.f32 %v236_v52, %v83_v0  ;;  %v1294_v0 = vld [vmem:[%s1907_s3 + $0x70] sm:$0xff] }
  0x9e   :  { %821 = vperm.xlu0 %1325, %v775_v14   ;;  %811 = vperm.xlu2 %1327, %v773_v15  }
  0x9f   :  { %v246_v17 = vpop.f32.mrf.mxu2  ;;  %v261_v18 = vpop.f32.mrf.mxu3  ;;  %v273_v11 = vmax.f32 %v237_v13, 0.0 }
  0xa0   :  { %v262_v42 = vadd.f32 %v261_v18, %v133_v20  ;;  %v247_v60 = vadd.f32 %v246_v17, %v103_v41  ;;  %v78_v6 = vpop.permute.xlu0 %77  ;;  %v289_v20 = vpack.c.bf16 %v276_v12, %v275_v9 }
  0xa1   :  { %v234_v18 = vadd.f32 %v233_v35, %v78_v6 }
  0xa2   :  { %v283_v51 = vmax.f32 %v262_v42, 0.0  ;;  %v277_v4 = vmax.f32 %v247_v60, 0.0  ;;  %v238_v8 = vpop.f32.mrf.mxu0 }
  0xa3   :  { %v239_v14 = vadd.f32 %v238_v8, %v88_v10 }
  0xa5   :  { %801 = vperm.xlu1 %1326, %v771_v19   ;;  %v274_v19 = vmax.f32 %v239_v14, 0.0 }
  0xa6   :  { %796 = vperm.xlu0 %1325, %v770_v21   ;;  %786 = vperm.xlu2 %1327, %v768_v22   ;;  %v272_v22 = vmax.f32 %v234_v18, 0.0 }
  0xa7   :  { %v263_v25 = vpop.f32.mrf.mxu3  ;;  %v248_v26 = vpop.f32.mrf.mxu2  ;;  %v288_v23 = vpack.c.bf16 %v274_v19, %v273_v11 }
  0xa8   :  { %v264_v39 = vadd.f32 %v263_v25, %v138_v30  ;;  %v249_v61 = vadd.f32 %v248_v26, %v108_v45  ;;  %v1280_v25 = vld [vmem:[%s1907_s3] sm:$0xff]  ;;  %v1286_v26 = vld [vmem:[%s1907_s3 + $0x30] sm:$0xff]  ;;  %v1666_v32 = vpop.permute.xlu0 %511  ;;  %v1285_v45 = vld [vmem:[%s1907_s3 + $0x28] sm:$0xff] }
  0xa9   :  { %v1288_v30 = vld [vmem:[%s1907_s3 + $0x40] sm:$0xff] }
  0xaa   :  { %v284_v47 = vmax.f32 %v264_v39, 0.0  ;;  %v278_v5 = vmax.f32 %v249_v61, 0.0 }
  0xac   :  { %v293_v55 = vpack.c.bf16 %v284_v47, %v283_v51  ;;  %v290_v15 = vpack.c.bf16 %v278_v5, %v277_v4 }
  0xad   :  { %1070 = vperm.xlu1 %1326, %v1067_v27   ;;  %v1281_v27 = vld [vmem:[%s1907_s3 + $0x8] sm:$0xff] }
  0xae   :  { %791 = vperm.xlu0 %1325, %v769_v29   ;;  %v1282_v29 = vld [vmem:[%s1907_s3 + $0x10] sm:$0xff] }
  0xaf   :  { %v266_v31 = vpop.f32.mrf.mxu3  ;;  %v251_v34 = vpop.f32.mrf.mxu2 }
  0xb0   :  { %v267_v36 = vadd.f32 %v266_v31, %v143_v16  ;;  %v252_v58 = vadd.f32 %v251_v34, %v113_v33  ;;  %v73_v16 = vpop.permute.xlu2 %72  ;;  %v1283_v33 = vld [vmem:[%s1907_s3 + $0x18] sm:$0xff]  ;;  %v1289_v34 = vld [vmem:[%s1907_s3 + $0x48] sm:$0xff] }
  0xb1   :  { %v232_v17 = vadd.f32 %v1638_v28, %v73_v16  ;;  %v1287_v28 = vld [vmem:[%s1907_s3 + $0x38] sm:$0xff] }
  0xb2   :  { %v285_v43 = vmax.f32 %v267_v36, 0.0  ;;  %v279_v1 = vmax.f32 %v252_v58, 0.0  ;;  %v427_v36 = vpop.permute.xlu0 %426 }
  0xb3   :  { %v271_v21 = vmax.f32 %v232_v17, 0.0 }
  0xb7   :  { %v268_v38 = vpop.f32.mrf.mxu3  ;;  %v253_v49 = vpop.f32.mrf.mxu2 }
  0xb8   :  { %v269_v40 = vadd.f32 %v268_v38, %v148_v24  ;;  %v254_v54 = vadd.f32 %v253_v49, %v118_v37  ;;  %v287_v24 = vpack.c.bf16 %v272_v22, %v271_v21  ;;  %v1664_v31 = vpop.permute.xlu2 %436  ;;  %v1284_v37 = vld [vmem:[%s1907_s3 + $0x20] sm:$0xff]  ;;  %v1290_v38 = vld [vmem:[%s1907_s3 + $0x50] sm:$0xff] }
  0xba   :  { %v286_v44 = vmax.f32 %v269_v40, 0.0  ;;  %v280_v62 = vmax.f32 %v254_v54, 0.0  ;;  %v432_v40 = vpop.permute.xlu1 %431  ;;  %v1682_v41 = vpop.permute.xlu0 %411 }
  0xbc   :  { %v294_v48 = vpack.c.bf16 %v286_v44, %v285_v43  ;;  %v291_v7 = vpack.c.bf16 %v280_v62, %v279_v1 }
  0xbe   :  { %615 = vmatpush.bf16.msrb.mxu0 %v294_v48  ;;  %1314 = vmatpush.bf16.msra.mxu1 %v294_v48 }
  0xc0   :  { %v422_v35 = vpop.permute.xlu2 %421 }
  0xc2   :  { %616 = vmatpush.bf16.msrb.mxu0 %v293_v55  ;;  %1315 = vmatpush.bf16.msra.mxu1 %v293_v55  ;;  %v1686_v43 = vpop.permute.xlu1 %516  ;;  %v1688_v44 = vpop.permute.xlu0 %496 }
  0xc6   :  { %617 = vmatpush.bf16.msrb.mxu0 %v292_v63  ;;  %1316 = vmatpush.bf16.msra.mxu1 %v292_v63 }
  0xc8   :  { %v1680_v39 = vpop.permute.xlu2 %506 }
  0xca   :  { %618 = vmatpush.bf16.msrb.mxu0 %v291_v7  ;;  %1317 = vmatpush.bf16.msra.mxu1 %v291_v7  ;;  %v1698_v48 = vpop.permute.xlu1 %501  ;;  %v1700_v49 = vpop.permute.xlu0 %481 }
  0xce   :  { %619 = vmatpush.bf16.msrb.mxu0 %v290_v15  ;;  %1318 = vmatpush.bf16.msra.mxu1 %v290_v15  ;;  %v1295_v15 = vld [vmem:[%s1907_s3 + $0x78] sm:$0xff] }
  0xd0   :  { %v1684_v42 = vpop.permute.xlu2 %491 }
  0xd2   :  { %620 = vmatpush.bf16.msrb.mxu0 %v289_v20  ;;  %1319 = vmatpush.bf16.msra.mxu1 %v289_v20  ;;  %v1704_v51 = vpop.permute.xlu1 %416  ;;  %v1706_v52 = vpop.permute.xlu0 %396 }
  0xd6   :  { %621 = vmatpush.bf16.msrb.mxu0 %v288_v23  ;;  %1320 = vmatpush.bf16.msra.mxu1 %v288_v23 }
  0xd8   :  { %v1696_v47 = vpop.permute.xlu2 %406 }
  0xda   :  { %622 = vmatpush.bf16.msrb.mxu0 %v287_v24  ;;  %1321 = vmatpush.bf16.msra.mxu1 %v287_v24  ;;  %v1713_v55 = vpop.permute.xlu1 %401  ;;  %v1715_v56 = vpop.permute.xlu0 %381 }
  0xdd   :  { %623 = vmatmul.bf16.vlgmr.msrb.gmra.mxu0 %v1280_v25  ;;  %653 = vmatmul.bf16.vlgmr.msra.gmra.mxu1 %v1286_v26 }
  0xe0   :  { %v1702_v50 = vpop.permute.xlu2 %391 }
  0xe2   :  { %v1722_v59 = vpop.permute.xlu1 %486  ;;  %v1724_v60 = vpop.permute.xlu0 %466 }
  0xe8   :  { %v1711_v54 = vpop.permute.xlu2 %476 }
  0xea   :  { %v1726_v62 = vpop.permute.xlu1 %471  ;;  %v452_v63 = vpop.permute.xlu0 %451 }
  0xed   :  { %628 = vmatmul.bf16.gmra.mxu0 %v1281_v27  ;;  %658 = vmatmul.bf16.gmra.mxu1 %v1287_v28 }
  0xf0   :  { %v1720_v58 = vpop.permute.xlu2 %461 }
  0xf2   :  { %v1731_v4 = vpop.permute.xlu1 %386  ;;  %v367_v5 = vpop.permute.xlu0 %366 }
  0xf8   :  { %v377_v61 = vpop.permute.xlu2 %376 }
  0xfa   :  { %v372_v6 = vpop.permute.xlu1 %371 }
  0xfd   :  { %633 = vmatmul.bf16.gmra.mxu0 %v1282_v29  ;;  %663 = vmatmul.bf16.gmra.mxu1 %v1288_v30 }
 0x100   :  { %v362_v3 = vpop.permute.xlu2 %361 }
 0x102   :  { %v457_v29 = vpop.permute.xlu1 %456 }
 0x10d   :  { %638 = vmatmul.bf16.gmra.mxu0 %v1283_v33  ;;  %668 = vmatmul.bf16.gmra.mxu1 %v1289_v34 }
 0x11d   :  { %643 = vmatmul.bf16.gmra.mxu0 %v1284_v37  ;;  %673 = vmatmul.bf16.gmra.mxu1 %v1290_v38 }
 0x12d   :  { %648 = vmatmul.bf16.gmra.mxu0 %v1285_v45  ;;  %678 = vmatmul.bf16.gmra.mxu1 %v1291_v46  ;;  %v447_v46 = vpop.permute.xlu2 %446 }
 0x13d   :  { %683 = vmatmul.bf16.gmra.mxu1 %v1292_v53 }
 0x14d   :  { %688 = vmatmul.bf16.gmra.mxu1 %v1293_v57 }
 0x15a   :  { %v624_v1 = vpop.f32.mrf.mxu0  ;;  %v654_v2 = vpop.f32.mrf.mxu1 }
 0x15b   :  { %v625_v7 = vadd.f32 %v624_v1, %v362_v3  ;;  %v655_v24 = vadd.f32 %v654_v2, %v422_v35 }
 0x15d   :  { %693 = vmatmul.bf16.gmra.mxu1 %v1294_v0  ;;  %v704_v12 = vmax.f32 %v625_v7, 0.0  ;;  %v716_v37 = vmax.f32 %v655_v24, 0.0 }
 0x162   :  { %v626_v8 = vpop.f32.mrf.mxu0  ;;  %v656_v9 = vpop.f32.mrf.mxu1 }
 0x163   :  { %v627_v10 = vadd.f32 %v626_v8, %v367_v5  ;;  %v657_v21 = vadd.f32 %v656_v9, %v427_v36  ;;  %v442_v36 = vpop.permute.xlu1 %441 }
 0x165   :  { %v705_v13 = vmax.f32 %v627_v10, 0.0  ;;  %v717_v30 = vmax.f32 %v657_v21, 0.0 }
 0x167   :  { %v1733_v14 = vpack.c.bf16 %v705_v13, %v704_v12  ;;  %v742_v45 = vpack.c.bf16 %v717_v30, %v716_v37 }
 0x16a   :  { %v629_v16 = vpop.f32.mrf.mxu0  ;;  %v659_v17 = vpop.f32.mrf.mxu1 }
 0x16b   :  { %v630_v18 = vadd.f32 %v629_v16, %v372_v6  ;;  %v660_v11 = vadd.f32 %v659_v17, %v432_v40 }
 0x16d   :  { %698 = vmatmul.bf16.gmra.mxu1 %v1295_v15  ;;  %v706_v25 = vmax.f32 %v630_v18, 0.0  ;;  %v718_v26 = vmax.f32 %v660_v11, 0.0 }
 0x172   :  { %v631_v19 = vpop.f32.mrf.mxu0  ;;  %v661_v20 = vpop.f32.mrf.mxu1 }
 0x173   :  { %v632_v22 = vadd.f32 %v631_v19, %v377_v61  ;;  %v662_v23 = vadd.f32 %v661_v20, %v1664_v31 }
 0x175   :  { %v707_v27 = vmax.f32 %v632_v22, 0.0  ;;  %v719_v28 = vmax.f32 %v662_v23, 0.0 }
 0x177   :  { %v743_v33 = vpack.c.bf16 %v719_v28, %v718_v26  ;;  %v1739_v34 = vpack.c.bf16 %v707_v27, %v706_v25 }
 0x179   :  { %944 = vmatpush.bf16.msrb.mxu2 %v743_v33 }
 0x17a   :  { %v634_v38 = vpop.f32.mrf.mxu0  ;;  %v664_v40 = vpop.f32.mrf.mxu1 }
 0x17b   :  { %v665_v53 = vadd.f32 %v664_v40, %v442_v36 }
 0x17d   :  { %945 = vmatpush.bf16.msrb.mxu2 %v742_v45  ;;  %v720_v61 = vmax.f32 %v665_v53, 0.0 }
 0x182   :  { %v636_v31 = vpop.f32.mrf.mxu0  ;;  %v666_v35 = vpop.f32.mrf.mxu1 }
 0x183   :  { %v667_v57 = vadd.f32 %v666_v35, %v447_v46 }
 0x185   :  { %v721_v0 = vmax.f32 %v667_v57, 0.0 }
 0x187   :  { %v1741_v1 = vpack.c.bf16 %v721_v0, %v720_v61 }
 0x18a   :  { %v639_v2 = vpop.f32.mrf.mxu0  ;;  %v669_v3 = vpop.f32.mrf.mxu1 }
 0x18b   :  { %v670_v5 = vadd.f32 %v669_v3, %v452_v63 }
 0x18d   :  { %v722_v10 = vmax.f32 %v670_v5, 0.0 }
 0x192   :  { %v641_v7 = vpop.f32.mrf.mxu0  ;;  %v671_v8 = vpop.f32.mrf.mxu1 }
 0x193   :  { %v672_v9 = vadd.f32 %v671_v8, %v457_v29  ;;  %v642_v40 = vadd.f32 %v641_v7, %v1706_v52 }
 0x195   :  { %v723_v12 = vmax.f32 %v672_v9, 0.0  ;;  %v1226_v9 = vld [vmem:[%s1909_s5 + $0x20] sm:$0xf] }
 0x197   :  { %v1743_v13 = vpack.c.bf16 %v723_v12, %v722_v10 }
 0x19a   :  { %v644_v15 = vpop.f32.mrf.mxu0  ;;  %v674_v16 = vpop.f32.mrf.mxu1 }
 0x19b   :  { %v675_v17 = vadd.f32 %v674_v16, %v1720_v58 }
 0x19d   :  { %v724_v19 = vmax.f32 %v675_v17, 0.0 }
 0x1a2   :  { %v646_v6 = vpop.f32.mrf.mxu0  ;;  %v676_v18 = vpop.f32.mrf.mxu1 }
 0x1a3   :  { %v677_v11 = vadd.f32 %v676_v18, %v1724_v60  ;;  %v647_v27 = vadd.f32 %v646_v6, %v1696_v47  ;;  %v645_v60 = vadd.f32 %v644_v15, %v1713_v55  ;;  %v635_v55 = vadd.f32 %v634_v38, %v1715_v56 }
 0x1a5   :  { %v725_v20 = vmax.f32 %v677_v11, 0.0  ;;  %v713_v45 = vmax.f32 %v647_v27, 0.0  ;;  %v712_v46 = vmax.f32 %v645_v60, 0.0  ;;  %v708_v52 = vmax.f32 %v635_v55, 0.0  ;;  %v1311_v55 = vld [vmem:[%s1909_s5 + $0x74] sm:$0xf0] }
 0x1a7   :  { %v1747_v21 = vpack.c.bf16 %v725_v20, %v724_v19  ;;  %v740_v53 = vpack.c.bf16 %v713_v45, %v712_v46  ;;  %v1298_v45 = vld [vmem:[%s1909_s5 + $0x14] sm:$0xf] }
 0x1aa   :  { %v649_v63 = vpop.f32.mrf.mxu0  ;;  %v679_v22 = vpop.f32.mrf.mxu1 }
 0x1ab   :  { %v650_v23 = vadd.f32 %v649_v63, %v1682_v41  ;;  %v680_v24 = vadd.f32 %v679_v22, %v1726_v62  ;;  %v640_v62 = vadd.f32 %v639_v2, %v1702_v50  ;;  %v1210_v50 = vld [vmem:[%s1909_s5] sm:$0xf]  ;;  %v1218_v2 = vld [vmem:[%s1909_s5 + $0x10] sm:$0xf] }
 0x1ad   :  { %v714_v29 = vmax.f32 %v650_v23, 0.0  ;;  %v726_v30 = vmax.f32 %v680_v24, 0.0  ;;  %v710_v35 = vmax.f32 %v640_v62, 0.0  ;;  %v1309_v62 = vld [vmem:[%s1909_s5 + $0x64] sm:$0xf0] }
 0x1b2   :  { %v651_v25 = vpop.f32.mrf.mxu0  ;;  %v681_v26 = vpop.f32.mrf.mxu1 }
 0x1b3   :  { %v652_v58 = vadd.f32 %v651_v25, %v1704_v51  ;;  %v682_v28 = vadd.f32 %v681_v26, %v1711_v54  ;;  %v637_v51 = vadd.f32 %v636_v31, %v1731_v4  ;;  %v711_v54 = vmax.f32 %v642_v40, 0.0  ;;  %v1297_v4 = vld [vmem:[%s1909_s5 + $0x4] sm:$0xf0]  ;;  %v1250_v40 = vld [vmem:[%s1909_s5 + $0x50] sm:$0xf] }
 0x1b4   :  { %v1211_v38 = vor.u32 %v1297_v4, %v1210_v50  ;;  %v1306_v4 = vld [vmem:[%s1909_s5 + $0x54] sm:$0xf] }
 0x1b5   :  { %v715_v33 = vmax.f32 %v652_v58, 0.0  ;;  %v727_v37 = vmax.f32 %v682_v28, 0.0  ;;  %v709_v57 = vmax.f32 %v637_v51, 0.0  ;;  %v739_v61 = vpack.c.bf16 %v711_v54, %v710_v35  ;;  %v1228_v51 = vld [vmem:[%s1909_s5 + $0x28] sm:$0xf0] }
 0x1b7   :  { %v741_v41 = vpack.c.bf16 %v715_v33, %v714_v29  ;;  %v1756_v36 = vpack.c.bf16 %v727_v37, %v726_v30  ;;  %v738_v3 = vpack.c.bf16 %v709_v57, %v708_v52  ;;  %v1305_v29 = vld [vmem:[%s1909_s5 + $0x44] sm:$0xf0]  ;;  %v1296_v30 = vld [vmem:[%s1909_s5 + $0x4] sm:$0xf]  ;;  %v1212_v33 = vld [vmem:[%s1909_s5 + $0x8] sm:$0xf0] }
 0x1b8   :  { %v1215_v37 = vor.u32 %v1296_v30, %v1212_v33  ;;  %v1302_v57 = vld [vmem:[%s1909_s5 + $0x34] sm:$0xf] }
 0x1b9   :  { %946 = vmatpush.bf16.msrb.mxu2 %v741_v41  ;;  %v1220_v41 = vld [vmem:[%s1909_s5 + $0x18] sm:$0xf0] }
 0x1ba   :  { %v684_v47 = vpop.f32.mrf.mxu1 }
 0x1bd   :  { %947 = vmatpush.bf16.msrb.mxu2 %v740_v53  ;;  %v1266_v53 = vld [vmem:[%s1909_s5 + $0x70] sm:$0xf] }
 0x1be   :  { %v1267_v35 = vor.u32 %v1311_v55, %v1266_v53 }
 0x1c1   :  { %948 = vmatpush.bf16.msrb.mxu2 %v739_v61  ;;  %v1236_v61 = vld [vmem:[%s1909_s5 + $0x38] sm:$0xf0] }
 0x1c2   :  { %v686_v0 = vpop.f32.mrf.mxu1  ;;  %v1239_v52 = vor.u32 %v1302_v57, %v1236_v61 }
 0x1c5   :  { %949 = vmatpush.bf16.msrb.mxu2 %v738_v3  ;;  %v1244_v3 = vld [vmem:[%s1909_s5 + $0x48] sm:$0xf0] }
 0x1c9   :  { %950 = vmatpush.bf16.msrb.mxu2 %v1739_v34  ;;  %v1299_v34 = vld [vmem:[%s1909_s5 + $0x14] sm:$0xf0] }
 0x1ca   :  { %v689_v56 = vpop.f32.mrf.mxu1  ;;  %v1219_v7 = vor.u32 %v1299_v34, %v1218_v2  ;;  %v1861_v2 = vpop.permute.xlu2 %846  ;;  %v1308_v34 = vld [vmem:[%s1909_s5 + $0x64] sm:$0xf] }
 0x1cb   :  { %v690_v23 = vadd.f32 %v689_v56, %v1684_v42  ;;  %v1252_v56 = vld [vmem:[%s1909_s5 + $0x58] sm:$0xf0] }
 0x1cd   :  { %951 = vmatpush.bf16.msrb.mxu2 %v1733_v14  ;;  %v1301_v14 = vld [vmem:[%s1909_s5 + $0x24] sm:$0xf0]  ;;  %v730_v27 = vmax.f32 %v690_v23, 0.0 }
 0x1ce   :  { %v1227_v12 = vor.u32 %v1301_v14, %v1226_v9 }
 0x1d0   :  { %952 = vmatmul.bf16.vlgmr.msrb.gmra.mxu2 %v1211_v38  ;;  %v1255_v38 = vor.u32 %v1306_v4, %v1252_v56 }
 0x1d2   :  { %v691_v31 = vpop.f32.mrf.mxu1  ;;  %v1871_v14 = vpop.permute.xlu2 %841 }
 0x1d3   :  { %v692_v20 = vadd.f32 %v691_v31, %v1688_v44  ;;  %v685_v44 = vadd.f32 %v684_v47, %v1700_v49  ;;  %v1300_v47 = vld [vmem:[%s1909_s5 + $0x24] sm:$0xf]  ;;  %v1859_v31 = vpop.permute.xlu0 %856 }
 0x1d4   :  { %v1231_v54 = vor.u32 %v1300_v47, %v1228_v51 }
 0x1d5   :  { %v728_v28 = vmax.f32 %v685_v44, 0.0 }
 0x1da   :  { %v694_v5 = vpop.f32.mrf.mxu1 }
 0x1db   :  { %v695_v18 = vadd.f32 %v694_v5, %v1698_v48  ;;  %v731_v48 = vmax.f32 %v692_v20, 0.0  ;;  %v1260_v5 = vld [vmem:[%s1909_s5 + $0x68] sm:$0xf0] }
 0x1dd   :  { %v732_v24 = vmax.f32 %v695_v18, 0.0  ;;  %v749_v58 = vpack.c.bf16 %v731_v48, %v730_v27  ;;  %v1879_v18 = vpop.permute.xlu1 %861 }
 0x1e0   :  { %957 = vmatmul.bf16.gmra.mxu2 %v1219_v7  ;;  %v1263_v7 = vor.u32 %v1308_v34, %v1260_v5 }
 0x1e2   :  { %v696_v8 = vpop.f32.mrf.mxu1 }
 0x1e3   :  { %v697_v17 = vadd.f32 %v696_v8, %v1680_v39  ;;  %v1303_v39 = vld [vmem:[%s1909_s5 + $0x34] sm:$0xf0]  ;;  %v1869_v8 = vpop.permute.xlu0 %851 }
 0x1e5   :  { %v733_v63 = vmax.f32 %v697_v17, 0.0 }
 0x1e7   :  { %v750_v25 = vpack.c.bf16 %v733_v63, %v732_v24  ;;  %v1881_v63 = vpop.permute.xlu1 %836 }
 0x1ea   :  { %v699_v10 = vpop.f32.mrf.mxu1 }
 0x1eb   :  { %v700_v15 = vadd.f32 %v699_v10, %v1666_v32  ;;  %v1234_v32 = vld [vmem:[%s1909_s5 + $0x30] sm:$0xf]  ;;  %v1310_v10 = vld [vmem:[%s1909_s5 + $0x74] sm:$0xf] }
 0x1ec   :  { %v1235_v26 = vor.u32 %v1303_v39, %v1234_v32 }
 0x1ed   :  { %v734_v11 = vmax.f32 %v700_v15, 0.0  ;;  %v827_v15 = vpop.permute.xlu0 %826 }
 0x1ef   :  { %v1883_v48 = vpop.permute.xlu1 %831 }
 0x1f0   :  { %962 = vmatmul.bf16.gmra.mxu2 %v1227_v12  ;;  %v1268_v12 = vld [vmem:[%s1909_s5 + $0x78] sm:$0xf0] }
 0x1f1   :  { %v1271_v17 = vor.u32 %v1310_v10, %v1268_v12 }
 0x1f2   :  { %v701_v16 = vpop.f32.mrf.mxu1 }
 0x1f3   :  { %v702_v6 = vadd.f32 %v701_v16, %v1686_v43  ;;  %v687_v43 = vadd.f32 %v686_v0, %v1722_v59  ;;  %v1242_v59 = vld [vmem:[%s1909_s5 + $0x40] sm:$0xf]  ;;  %v1304_v0 = vld [vmem:[%s1909_s5 + $0x44] sm:$0xf] }
 0x1f4   :  { %v1243_v49 = vor.u32 %v1305_v29, %v1242_v59  ;;  %v1247_v50 = vor.u32 %v1304_v0, %v1244_v3 }
 0x1f5   :  { %v735_v19 = vmax.f32 %v702_v6, 0.0  ;;  %v729_v42 = vmax.f32 %v687_v43, 0.0  ;;  %v817_v6 = vpop.permute.xlu2 %816 }
 0x1f7   :  { %v751_v22 = vpack.c.bf16 %v735_v19, %v734_v11  ;;  %v748_v60 = vpack.c.bf16 %v729_v42, %v728_v28  ;;  %v822_v11 = vpop.permute.xlu0 %821 }
 0x1f9   :  { %993 = vmatpush.bf16.msrb.mxu3 %v751_v22 }
 0x1fd   :  { %994 = vmatpush.bf16.msrb.mxu3 %v750_v25  ;;  %v812_v20 = vpop.permute.xlu2 %811 }
 0x1ff   :  { %v797_v22 = vpop.permute.xlu0 %796 }
 0x200   :  { %967 = vmatmul.bf16.gmra.mxu2 %v1235_v26 }
 0x201   :  { %995 = vmatpush.bf16.msrb.mxu3 %v749_v58 }
 0x205   :  { %996 = vmatpush.bf16.msrb.mxu3 %v748_v60  ;;  %v787_v24 = vpop.permute.xlu2 %786  ;;  %v807_v60 = vpop.permute.xlu1 %806 }
 0x207   :  { %v792_v25 = vpop.permute.xlu0 %791 }
 0x209   :  { %997 = vmatpush.bf16.msrb.mxu3 %v1756_v36  ;;  %v1258_v36 = vld [vmem:[%s1909_s5 + $0x60] sm:$0xf] }
 0x20a   :  { %v1259_v46 = vor.u32 %v1309_v62, %v1258_v36 }
 0x20d   :  { %998 = vmatpush.bf16.msrb.mxu3 %v1747_v21 }
 0x210   :  { %972 = vmatmul.bf16.gmra.mxu2 %v1243_v49 }
 0x211   :  { %999 = vmatpush.bf16.msrb.mxu3 %v1743_v13  ;;  %v1307_v13 = vld [vmem:[%s1909_s5 + $0x54] sm:$0xf0] }
 0x212   :  { %v1251_v21 = vor.u32 %v1307_v13, %v1250_v40 }
 0x215   :  { %1000 = vmatpush.bf16.msrb.mxu3 %v1741_v1  ;;  %v1223_v1 = vor.u32 %v1298_v45, %v1220_v41 }
 0x218   :  { %1001 = vmatmul.bf16.vlgmr.msrb.gmra.mxu3 %v1215_v37  ;;  %v802_v37 = vpop.permute.xlu1 %801 }
 0x220   :  { %977 = vmatmul.bf16.gmra.mxu2 %v1251_v21 }
 0x228   :  { %1006 = vmatmul.bf16.gmra.mxu3 %v1223_v1 }
 0x230   :  { %982 = vmatmul.bf16.gmra.mxu2 %v1259_v46 }
 0x238   :  { %1011 = vmatmul.bf16.gmra.mxu3 %v1231_v54 }
 0x240   :  { %987 = vmatmul.bf16.gmra.mxu2 %v1267_v35 }
 0x248   :  { %1016 = vmatmul.bf16.gmra.mxu3 %v1239_v52 }
 0x253   :  { %v953_v9 = vpop.f32.mrf.mxu2 }
 0x254   :  { %v954_v32 = vadd.f32 %v953_v9, %v787_v24 }
 0x258   :  { %1021 = vmatmul.bf16.gmra.mxu3 %v1247_v50 }
 0x25b   :  { %v955_v16 = vpop.f32.mrf.mxu2 }
 0x25c   :  { %v956_v44 = vadd.f32 %v955_v16, %v792_v25 }
 0x263   :  { %v958_v19 = vpop.f32.mrf.mxu2 }
 0x264   :  { %v959_v29 = vadd.f32 %v958_v19, %v797_v22 }
 0x268   :  { %1026 = vmatmul.bf16.gmra.mxu3 %v1255_v38 }
 0x26b   :  { %v960_v23 = vpop.f32.mrf.mxu2 }
 0x26c   :  { %v961_v40 = vadd.f32 %v960_v23, %v802_v37 }
 0x273   :  { %v963_v26 = vpop.f32.mrf.mxu2 }
 0x274   :  { %v964_v62 = vadd.f32 %v963_v26, %v807_v60 }
 0x278   :  { %1031 = vmatmul.bf16.gmra.mxu3 %v1263_v7 }
 0x27b   :  { %v965_v49 = vpop.f32.mrf.mxu2 }
 0x27c   :  { %v966_v54 = vadd.f32 %v965_v49, %v812_v20 }
 0x283   :  { %v968_v45 = vpop.f32.mrf.mxu2 }
 0x284   :  { %v969_v0 = vadd.f32 %v968_v45, %v817_v6 }
 0x288   :  { %1036 = vmatmul.bf16.gmra.mxu3 %v1271_v17 }
 0x28b   :  { %v970_v51 = vpop.f32.mrf.mxu2 }
 0x28c   :  { %v971_v4 = vadd.f32 %v970_v51, %v822_v11 }
 0x293   :  { %v973_v52 = vpop.f32.mrf.mxu2 }
 0x294   :  { %v974_v10 = vadd.f32 %v973_v52, %v827_v15 }
 0x29b   :  { %v1002_v39 = vpop.f32.mrf.mxu3  ;;  %v975_v56 = vpop.f32.mrf.mxu2 }
 0x29c   :  { %v1003_v43 = vadd.f32 %v1002_v39, %v954_v32 }
 0x29e   :  { %v1042_v58 = vmax.f32 %v1003_v43, 0.0 }
 0x2a3   :  { %v1004_v27 = vpop.f32.mrf.mxu3  ;;  %v978_v17 = vpop.f32.mrf.mxu2 }
 0x2a4   :  { %v1005_v42 = vadd.f32 %v1004_v27, %v956_v44  ;;  %v979_v37 = vadd.f32 %v978_v17, %v1881_v63  ;;  %v1066_v63 = vld [vmem:[%s1911_s7] sm:$0x1] }
 0x2a6   :  { %v1043_v28 = vmax.f32 %v1005_v42, 0.0 }
 0x2a8   :  { %v1885_v59 = vpack.c.bf16 %v1043_v28, %v1042_v58 }
 0x2ab   :  { %v1007_v30 = vpop.f32.mrf.mxu3  ;;  %v980_v20 = vpop.f32.mrf.mxu2 }
 0x2ac   :  { %v1008_v33 = vadd.f32 %v1007_v30, %v959_v29  ;;  %v981_v29 = vadd.f32 %v980_v20, %v1871_v14 }
 0x2ae   :  { %v1044_v41 = vmax.f32 %v1008_v33, 0.0 }
 0x2b3   :  { %v1009_v13 = vpop.f32.mrf.mxu3  ;;  %v983_v23 = vpop.f32.mrf.mxu2 }
 0x2b4   :  { %v1010_v21 = vadd.f32 %v1009_v13, %v961_v40  ;;  %v984_v58 = vadd.f32 %v983_v23, %v1861_v2 }
 0x2b6   :  { %v1045_v1 = vmax.f32 %v1010_v21, 0.0 }
 0x2b8   :  { %v1887_v36 = vpack.c.bf16 %v1045_v1, %v1044_v41 }
 0x2bb   :  { %v1012_v46 = vpop.f32.mrf.mxu3  ;;  %v985_v32 = vpop.f32.mrf.mxu2 }
 0x2bc   :  { %v1013_v47 = vadd.f32 %v1012_v46, %v964_v62  ;;  %v986_v44 = vadd.f32 %v985_v32, %v1869_v8  ;;  %v976_v8 = vadd.f32 %v975_v56, %v1883_v48  ;;  %v1071_v48 = vpop.permute.xlu1 %1070 }
 0x2bd   :  { %v1073_v51 = vperm.slane %v1071_v48, 0 }
 0x2be   :  { %v1046_v35 = vmax.f32 %v1013_v47, 0.0 }
 0x2c3   :  { %v1014_v53 = vpop.f32.mrf.mxu3  ;;  %v988_v43 = vpop.f32.mrf.mxu2 }
 0x2c4   :  { %v1015_v55 = vadd.f32 %v1014_v53, %v966_v54  ;;  %v989_v26 = vadd.f32 %v988_v43, %v1859_v31 }
 0x2c6   :  { %v1047_v57 = vmax.f32 %v1015_v55, 0.0 }
 0x2c8   :  { %v1060_v61 = vpack.c.bf16 %v1047_v57, %v1046_v35 }
 0x2cb   :  { %v1017_v3 = vpop.f32.mrf.mxu3  ;;  %v990_v25 = vpop.f32.mrf.mxu2 }
 0x2cc   :  { %v1018_v50 = vadd.f32 %v1017_v3, %v969_v0  ;;  %v991_v15 = vadd.f32 %v990_v25, %v1879_v18 }
 0x2ce   :  { %v1048_v5 = vmax.f32 %v1018_v50, 0.0 }
 0x2d3   :  { %v1019_v38 = vpop.f32.mrf.mxu3 }
 0x2d4   :  { %v1020_v34 = vadd.f32 %v1019_v38, %v971_v4 }
 0x2d6   :  { %v1049_v7 = vmax.f32 %v1020_v34, 0.0 }
 0x2d8   :  { %v1061_v9 = vpack.c.bf16 %v1049_v7, %v1048_v5 }
 0x2db   :  { %v1022_v12 = vpop.f32.mrf.mxu3 }
 0x2dc   :  { %v1023_v16 = vadd.f32 %v1022_v12, %v974_v10 }
 0x2de   :  { %v1050_v46 = vmax.f32 %v1023_v16, 0.0 }
 0x2e3   :  { %v1024_v19 = vpop.f32.mrf.mxu3 }
 0x2e4   :  { %v1025_v45 = vadd.f32 %v1024_v19, %v976_v8 }
 0x2e6   :  { %v1051_v62 = vmax.f32 %v1025_v45, 0.0 }
 0x2e8   :  { %v1062_v47 = vpack.c.bf16 %v1051_v62, %v1050_v46 }
 0x2eb   :  { %v1027_v22 = vpop.f32.mrf.mxu3 }
 0x2ec   :  { %v1028_v21 = vadd.f32 %v1027_v22, %v979_v37 }
 0x2ee   :  { %v1052_v1 = vmax.f32 %v1028_v21, 0.0 }
 0x2f3   :  { %v1029_v24 = vpop.f32.mrf.mxu3 }
 0x2f4   :  { %v1030_v40 = vadd.f32 %v1029_v24, %v981_v29 }
 0x2f6   :  { %v1053_v41 = vmax.f32 %v1030_v40, 0.0 }
 0x2f8   :  { %v1063_v14 = vpack.c.bf16 %v1053_v41, %v1052_v1 }
 0x2fb   :  { %v1032_v6 = vpop.f32.mrf.mxu3 }
 0x2fc   :  { %v1033_v49 = vadd.f32 %v1032_v6, %v984_v58 }
 0x2fe   :  { %v1054_v18 = vmax.f32 %v1033_v49, 0.0 }
 0x303   :  { %v1034_v39 = vpop.f32.mrf.mxu3 }
 0x304   :  { %v1035_v28 = vadd.f32 %v1034_v39, %v986_v44 }
 0x306   :  { %v1055_v13 = vmax.f32 %v1035_v28, 0.0 }
 0x308   :  { %v1064_v2 = vpack.c.bf16 %v1055_v13, %v1054_v18 }
 0x30b   :  { %v1037_v11 = vpop.f32.mrf.mxu3 }
 0x30c   :  { %v1038_v27 = vadd.f32 %v1037_v11, %v989_v26 }
 0x30e   :  { %v1056_v30 = vmax.f32 %v1038_v27, 0.0 }
 0x313   :  { %v1039_v42 = vpop.f32.mrf.mxu3 }
 0x314   :  { %v1040_v60 = vadd.f32 %v1039_v42, %v991_v15 }
 0x316   :  { %v1057_v33 = vmax.f32 %v1040_v60, 0.0 }
 0x318   :  { %v1065_v31 = vpack.c.bf16 %v1057_v33, %v1056_v30 }
 0x31a   :  { %1074 = vmatpush.bf16.msra.mxu0 %v1065_v31 }
 0x31e   :  { %1075 = vmatpush.bf16.msra.mxu0 %v1064_v2 }
 0x322   :  { %1076 = vmatpush.bf16.msra.mxu0 %v1063_v14 }
 0x326   :  { %1077 = vmatpush.bf16.msra.mxu0 %v1062_v47 }
 0x32a   :  { %1078 = vmatpush.bf16.msra.mxu0 %v1061_v9 }
 0x32e   :  { %1079 = vmatpush.bf16.msra.mxu0 %v1060_v61 }
 0x332   :  { %1080 = vmatpush.bf16.msra.mxu0 %v1887_v36 }
 0x336   :  { %1081 = vmatpush.bf16.msra.mxu0 %v1885_v59 }
 0x339   :  { %1082 = vmatmul.bf16.vlgmr.msra.gmra.mxu0 %v1066_v63 }
 0x3b6   :  { %v1083_v54 = vpop.f32.mrf.mxu0 }
 0x3b7   :  { %v1084_v53 = vadd.f32 %v1083_v54, %v1073_v51 }
 0x3b9   :  { %1087 = vst [vmem:[#allocation3] sm:$0x1] %v1084_v53 }
 0x3ba   :  { %1098 = dma.vmem_to_hbm [thread:$0]  %s1094_s20, 16, %s1096_s0, [#allocation4]  }
 0x3be   :  { %v1085_v59 = vpop.f32.mrf.mxu0 }
 0x3bf   :  { %1352 = dma.done.wait [#allocation4], 16  }
 0x3c0   :  { %1353 = vsyncadd [#allocation4], 4294967280 }
 0x3c1   :  { %1103 = vsyncpa [#allocation4], 1 }

</bundles_post_ra>
